<compile_context>
chip_gen: v6e
topology: v6e:2x2x1
jax: 0.10.0
libtpu: 0.0.40
codegen_flags: <defaults>
</compile_context>

<pallas_src>
import functools

import jax
import jax.numpy as jnp
from jax.experimental import pallas as pl
from jax.experimental.pallas import tpu as pltpu


_NEG_INF = -1e30  # finite f32 sentinel (exp underflows to exactly 0)


def _round_up(x, m):
    return ((x + m - 1) // m) * m


def _choose_block_b(batch, requested):
    """Batch-block size: a divisor of `batch` that is a multiple of 8
    (sublane aligned) or the full batch.  Auto mode prefers >= 4 (else >= 2)
    grid steps so the 'parallel' axis can be sharded across v7x's two
    TensorCores and the input pipeline has a next block to prefetch."""
    divisors = [d for d in range(1, batch + 1) if batch % d == 0]
    safe = [d for d in divisors if d % 8 == 0 or d == batch]
    if requested is not None:
        cands = [d for d in safe if d <= requested]
        return max(cands) if cands else min(safe)
    for min_blocks in (4, 2):
        cands = [d for d in safe if d % 8 == 0 and batch // d >= min_blocks]
        if cands:
            return max(cands)
    return batch


def attention_kernel(enc_ref, hb_ref, we_ref, v_ref, out_ref, m_ref, l_ref, *,
                     block_b, tile_s, seq_true, num_s_tiles,
                     matmul_dtype, elem_dtype, approx_recip):
    H = we_ref.shape[1]                      # padded hidden dim (mult. of 128)
    s = pl.program_id(1)                     # seq-tile index ("arbitrary" axis)

    # ---- init online-softmax state + resident output accumulator -----------
    @pl.when(s == 0)
    def _init():
        m_ref[...] = jnp.full(m_ref.shape, _NEG_INF, jnp.float32)
        l_ref[...] = jnp.zeros(l_ref.shape, jnp.float32)
        out_ref[...] = jnp.zeros(out_ref.shape, out_ref.dtype)

    # ---- encoder projection: one big MXU matmul per step -------------------
    # enc stays in its HBM dtype; cast to the MXU dtype here (no extra HBM
    # pass).  tile_s % 8 == 0 and H % 128 == 0 keep the reshapes as views.
    enc_flat = enc_ref[...].reshape(block_b * tile_s, H).astype(matmul_dtype)
    e_proj = jnp.dot(enc_flat, we_ref[...],
                     preferred_element_type=jnp.float32)       # (bB*tS, H) f32
    e_proj = e_proj.reshape(block_b, tile_s, H)

    # ---- energy = tanh(enc_proj + (hidden_proj + bias)) ---------------------
    # hidden projection + bias were hoisted out of the grid (hb_ref, f32).
    energy = jnp.tanh((e_proj + hb_ref[...][:, None, :]).astype(elem_dtype))

    # ---- score = <energy, v> over H -----------------------------------------
    # Per-128-lane-group VPU adds (f32 accumulation) + one final XLU reduce.
    ev = energy * v_ref[...].astype(elem_dtype)                # (bB, tS, H)
    acc = ev[..., 0:128].astype(jnp.float32)
    for g in range(1, H // 128):
        acc = acc + ev[..., g * 128:(g + 1) * 128].astype(jnp.float32)
    score = jnp.sum(acc, axis=-1)                              # (bB, tS) f32

    # ---- mask padded sequence positions (iota select, no concatenate) ------
    col = jax.lax.broadcasted_iota(jnp.int32, (block_b, tile_s), 1) + s * tile_s
    score = jnp.where(col < seq_true, score, _NEG_INF)

    # ---- online softmax over the (tiled) sequence axis ----------------------
    m_prev = m_ref[...]
    m_new = jnp.maximum(m_prev, jnp.max(score, axis=-1, keepdims=True))
    alpha = jnp.exp(m_prev - m_new)                            # == 0 at s == 0
    p = jnp.exp(score - m_new)                                 # (bB, tS) f32
    l_ref[...] = alpha * l_ref[...] + jnp.sum(p, axis=-1, keepdims=True)
    m_ref[...] = m_new

    @pl.when(s > 0)
    def _rescale_previous_tiles():
        out_ref[...] = out_ref[...] * alpha

    off = pl.multiple_of(s * tile_s, 128)                      # lane-aligned
    out_ref[:, pl.ds(off, tile_s)] = p

    @pl.when(s == num_s_tiles - 1)
    def _finalize():
        l = l_ref[...]
        if approx_recip:
            out_ref[...] = out_ref[...] * pl.reciprocal(l, approx=True)
        else:
            out_ref[...] = out_ref[...] / l


def attention_forward(hidden, encoder_outputs, w_attn, b_attn, w_v, *,
                      block_b=None, tile_s=None,
                      matmul_dtype=jnp.float32,
                      elementwise_dtype=jnp.float32,
                      approx_recip=True,
                      vmem_limit_bytes=48 * 1024 * 1024):
    """hidden: (L,B,H), encoder_outputs: (B,S,H), w_attn: (H,2H), b_attn: (H,),
    w_v: (1,H).  Returns attention weights (B, S), f32.

    Tuning: on v6e raise vmem_limit_bytes (~96 MiB) and sweep block_b/tile_s
    upward; on v7x keep vmem_limit_bytes <= ~48 MiB (S tiling / online
    softmax bounds the footprint automatically).  On v6e/v7x pass
    matmul_dtype=elementwise_dtype=bf16 for the fast path; on v5e use bf16
    matmul only (elementwise stays f32)."""
    L, B, H = hidden.shape
    Be, S, He = encoder_outputs.shape
    assert Be == B and He == H

    # ---- block / tile sizes --------------------------------------------------
    block_b = _choose_block_b(B, block_b)
    num_b = B // block_b
    H_pad = _round_up(H, 128)

    if tile_s is None:
        # Size the seq tile so the per-step working set (f32 enc double-buffer
        # + cast copy + f32 e_proj/energy ~= 16 B/elem) uses ~half the scoped
        # VMEM limit, leaving room for the resident output and the weights.
        budget = max(vmem_limit_bytes // 2, 1 << 20)
        per_row = block_b * H_pad * 16
        tile_s = max(128, (budget // per_row) // 128 * 128)
    tile_s = max(128, (tile_s // 128) * 128)
    tile_s = min(tile_s, _round_up(S, 128))
    S_data = _round_up(S, tile_s)
    num_s = S_data // tile_s

    # ---- host-side, grid-invariant prep --------------------------------------
    # Hoisted hidden projection + bias (tiny: B*H*H flops), kept in f32:
    #   [h ; enc] @ W^T == h @ W[:, :H]^T + enc @ W[:, H:]^T
    h_last = hidden[-1].astype(jnp.float32)                        # (B, H)
    hb = h_last @ w_attn[:, :H].T.astype(jnp.float32) + b_attn[None, :]
    we_t = w_attn[:, H:].T.astype(matmul_dtype)                    # (H, H)
    v2 = w_v.reshape(1, H).astype(jnp.float32)                     # (1, H)

    # Pad the feature dim to a multiple of 128 and the seq dim to a multiple
    # of the seq tile (zero padding is exact: padded energy columns hit v == 0
    # and padded seq rows are masked in-kernel).  These are no-ops at
    # production-aligned shapes.  encoder_outputs is NOT dtype-cast here.
    if H_pad > H:
        hb = jnp.pad(hb, ((0, 0), (0, H_pad - H)))
        we_t = jnp.pad(we_t, ((0, H_pad - H), (0, H_pad - H)))
        v2 = jnp.pad(v2, ((0, 0), (0, H_pad - H)))
    enc = encoder_outputs
    if S_data > S or H_pad > H:
        enc = jnp.pad(enc, ((0, 0), (0, S_data - S), (0, H_pad - H)))

    kernel = functools.partial(
        attention_kernel, block_b=block_b, tile_s=tile_s, seq_true=S,
        num_s_tiles=num_s, matmul_dtype=matmul_dtype,
        elem_dtype=elementwise_dtype, approx_recip=approx_recip)

    out_pad = pl.pallas_call(
        kernel,
        out_shape=jax.ShapeDtypeStruct((B, S_data), jnp.float32),
        grid_spec=pltpu.PrefetchScalarGridSpec(
            num_scalar_prefetch=0,
            grid=(num_b, num_s),
            in_specs=[
                pl.BlockSpec((block_b, tile_s, H_pad), lambda i, s: (i, s, 0)),
                pl.BlockSpec((block_b, H_pad), lambda i, s: (i, 0)),     # hb
                pl.BlockSpec((H_pad, H_pad), lambda i, s: (0, 0)),       # W_enc^T
                pl.BlockSpec((1, H_pad), lambda i, s: (0, 0)),           # v
            ],
            out_specs=pl.BlockSpec((block_b, S_data), lambda i, s: (i, 0)),
            scratch_shapes=[pltpu.VMEM((block_b, 1), jnp.float32),       # m
                            pltpu.VMEM((block_b, 1), jnp.float32)],      # l
        ),
        compiler_params=pltpu.CompilerParams(
            dimension_semantics=("parallel", "arbitrary"),
            vmem_limit_bytes=vmem_limit_bytes),
    )(enc, hb, we_t, v2)

    return out_pad[:, :S]


def reference_forward(hidden, encoder_outputs, w_attn, b_attn, w_v):
    """Pure-JAX reference mirroring the PyTorch forward exactly."""
    h = hidden[-1]                                               # (B, H)
    S = encoder_outputs.shape[1]
    h_exp = jnp.repeat(h[:, None, :], S, axis=1)                 # (B, S, H)
    cat = jnp.concatenate([h_exp, encoder_outputs], axis=2)      # (B, S, 2H)
    energy = jnp.tanh(cat @ w_attn.T + b_attn)                   # (B, S, H)
    score = (energy @ w_v.T)[..., 0]                             # (B, S)
    return jax.nn.softmax(score, axis=1)


def _make_inputs(key, L, B, S, H):
    k1, k2, k3, k4, k5 = jax.random.split(key, 5)
    hidden = jax.random.normal(k1, (L, B, H), dtype=jnp.float32)
    enc = jax.random.normal(k2, (B, S, H), dtype=jnp.float32)
    bound_attn = 1.0 / jnp.sqrt(2.0 * H)
    w_attn = jax.random.uniform(k3, (H, 2 * H), jnp.float32,
                                -bound_attn, bound_attn)
    b_attn = jax.random.uniform(k4, (H,), jnp.float32,
                                -bound_attn, bound_attn)
    bound_v = 1.0 / jnp.sqrt(float(H))
    w_v = jax.random.uniform(k5, (1, H), jnp.float32, -bound_v, bound_v)
    return hidden, enc, w_attn, b_attn, w_v


if __name__ == "__main__":
    # ---- test 1: small shapes, exact path (f32 MXU, exact softmax divide) ---
    L, B, S, H = 2, 2, 8, 32
    hidden, enc, w_attn, b_attn, w_v = _make_inputs(jax.random.PRNGKey(0),
                                                    L, B, S, H)
    ref = reference_forward(hidden, enc, w_attn, b_attn, w_v)
    out = attention_forward(hidden, enc, w_attn, b_attn, w_v,
                            matmul_dtype=jnp.float32,
                            elementwise_dtype=jnp.float32,
                            approx_recip=False)
    out = jax.block_until_ready(out)
    assert out.shape == (B, S)
    assert jnp.allclose(out, ref, atol=1e-5, rtol=1e-5), (out, ref)
    assert jnp.allclose(jnp.sum(out, axis=1), jnp.ones((B,)), atol=1e-5)

    # ---- test 2: multi-block grid (2 batch blocks x 3 seq tiles), exact -----
    L2, B2, S2, H2 = 2, 16, 300, 96
    h2, e2, wa2, ba2, wv2 = _make_inputs(jax.random.PRNGKey(1), L2, B2, S2, H2)
    ref2 = reference_forward(h2, e2, wa2, ba2, wv2)
    out2 = attention_forward(h2, e2, wa2, ba2, wv2, tile_s=128,
                             matmul_dtype=jnp.float32,
                             elementwise_dtype=jnp.float32,
                             approx_recip=False)
    out2 = jax.block_until_ready(out2)
    assert out2.shape == (B2, S2)
    assert jnp.allclose(out2, ref2, atol=1e-4, rtol=1e-4), (out2, ref2)
    assert jnp.allclose(jnp.sum(out2, axis=1), jnp.ones((B2,)), atol=1e-4)

    # ---- test 3: fast path (bf16 MXU + bf16 elementwise, EUP reciprocal) ----
    out3 = attention_forward(h2, e2, wa2, ba2, wv2, tile_s=128,
                             matmul_dtype=jnp.bfloat16,
                             elementwise_dtype=jnp.bfloat16,
                             approx_recip=True)
    out3 = jax.block_until_ready(out3)
    assert out3.shape == (B2, S2)
    assert jnp.allclose(out3, ref2, atol=2e-2, rtol=2e-2), (out3, ref2)
    assert jnp.allclose(jnp.sum(out3, axis=1), jnp.ones((B2,)), atol=2e-2)

    print("KERNEL_OK")
</pallas_src>

<mosaic_0001>
module attributes {stable_mosaic.version = 11 : i64} {
  func.func @attention_kernel(%arg0: i32, %arg1: i32, %arg2: memref<2x128x128xf32, #tpu.memory_space<vmem>>, %arg3: memref<2x128xf32, #tpu.memory_space<vmem>>, %arg4: memref<128x128xf32, #tpu.memory_space<vmem>>, %arg5: memref<1x128xf32, #tpu.memory_space<vmem>>, %arg6: memref<2x128xf32, #tpu.memory_space<vmem>>, %arg7: memref<2x1xf32, #tpu.memory_space<vmem>>, %arg8: memref<2x1xf32, #tpu.memory_space<vmem>>) attributes {dimension_semantics = [#tpu.dimension_semantics<parallel>, #tpu.dimension_semantics<arbitrary>], iteration_bounds = array<i64: 1, 1>, scalar_prefetch = 0 : i64, scratch_operands = 2 : i64, tpu.core_type = #tpu.core_type<tc>, window_params = [{transform_indices = @transform_0, window_bounds = array<i64: 2, 128, 128>}, {transform_indices = @transform_1, window_bounds = array<i64: 2, 128>}, {pipeline_mode = #tpu.pipeline_mode<synchronous>, transform_indices = @transform_2, window_bounds = array<i64: 128, 128>}, {pipeline_mode = #tpu.pipeline_mode<synchronous>, transform_indices = @transform_3, window_bounds = array<i64: 1, 128>}, {transform_indices = @transform_4, window_bounds = array<i64: 2, 128>}]} {
    %c0_i32 = arith.constant 0 : i32
    %0 = arith.cmpi eq, %arg1, %c0_i32 : i32
    %1 = arith.extui %0 : i1 to i32
    %c0_i32_0 = arith.constant 0 : i32
    %2 = arith.cmpi ne, %1, %c0_i32_0 : i32
    scf.if %2 {
      %cst_27 = arith.constant -1.000000e+30 : f32
      %52 = vector.broadcast %cst_27 : f32 to vector<2x1xf32>
      %c0_28 = arith.constant 0 : index
      %c0_29 = arith.constant 0 : index
      %53 = vector.load %arg7[%c0_28, %c0_29] : memref<2x1xf32, #tpu.memory_space<vmem>>, vector<2x1xf32>
      tpu.vector_store %arg7[%c0_28, %c0_29], %52 {strides = array<i32>} : memref<2x1xf32, #tpu.memory_space<vmem>>, vector<2x1xf32>,
      %cst_30 = arith.constant 0.000000e+00 : f32
      %54 = vector.broadcast %cst_30 : f32 to vector<2x1xf32>
      %c0_31 = arith.constant 0 : index
      %c0_32 = arith.constant 0 : index
      %55 = vector.load %arg8[%c0_31, %c0_32] : memref<2x1xf32, #tpu.memory_space<vmem>>, vector<2x1xf32>
      tpu.vector_store %arg8[%c0_31, %c0_32], %54 {strides = array<i32>} : memref<2x1xf32, #tpu.memory_space<vmem>>, vector<2x1xf32>,
      %cst_33 = arith.constant 0.000000e+00 : f32
      %56 = vector.broadcast %cst_33 : f32 to vector<2x128xf32>
      %c0_34 = arith.constant 0 : index
      %c0_35 = arith.constant 0 : index
      %57 = vector.load %arg6[%c0_34, %c0_35] : memref<2x128xf32, #tpu.memory_space<vmem>>, vector<2x128xf32>
      tpu.vector_store %arg6[%c0_34, %c0_35], %56 {strides = array<i32>} : memref<2x128xf32, #tpu.memory_space<vmem>>, vector<2x128xf32>,
    } else {
    }
    %c0 = arith.constant 0 : index
    %c0_1 = arith.constant 0 : index
    %c0_2 = arith.constant 0 : index
    %3 = vector.load %arg2[%c0, %c0_1, %c0_2] : memref<2x128x128xf32, #tpu.memory_space<vmem>>, vector<2x128x128xf32>
    %4 = vector.shape_cast %3 : vector<2x128x128xf32> to vector<256x128xf32>
    %c0_3 = arith.constant 0 : index
    %c0_4 = arith.constant 0 : index
    %5 = vector.load %arg4[%c0_3, %c0_4] : memref<128x128xf32, #tpu.memory_space<vmem>>, vector<128x128xf32>
    %cst = arith.constant dense<0.000000e+00> : vector<256x128xf32>
    %6 = tpu.matmul %4, %5, %cst {dimension_numbers = #tpu.dot_dimension_numbers<[1], [0], [0], [1], [0, 0, 1, 1], [], []>} : vector<256x128xf32>, vector<128x128xf32>, vector<256x128xf32> -> vector<256x128xf32>
    %7 = vector.shape_cast %6 : vector<256x128xf32> to vector<2x128x128xf32>
    %c0_5 = arith.constant 0 : index
    %c0_6 = arith.constant 0 : index
    %8 = vector.load %arg3[%c0_5, %c0_6] : memref<2x128xf32, #tpu.memory_space<vmem>>, vector<2x128xf32>
    %9 = vector.shape_cast %8 : vector<2x128xf32> to vector<2x1x128xf32>
    %10 = vector.broadcast %9 : vector<2x1x128xf32> to vector<2x128x128xf32>
    %11 = arith.addf %7, %10 : vector<2x128x128xf32>
    %12 = math.tanh %11 : vector<2x128x128xf32>
    %c0_7 = arith.constant 0 : index
    %c0_8 = arith.constant 0 : index
    %13 = vector.load %arg5[%c0_7, %c0_8] : memref<1x128xf32, #tpu.memory_space<vmem>>, vector<1x128xf32>
    %14 = vector.shape_cast %13 : vector<1x128xf32> to vector<1x1x128xf32>
    %15 = vector.broadcast %14 : vector<1x1x128xf32> to vector<2x128x128xf32>
    %16 = arith.mulf %12, %15 : vector<2x128x128xf32>
    %cst_9 = arith.constant dense<0.000000e+00> : vector<2x128xf32>
    %17 = vector.multi_reduction <add>, %16, %cst_9 [2] : vector<2x128x128xf32> to vector<2x128xf32>
    %18 = tpu.iota {dimensions = array<i32: 1>} : vector<2x128xi32>
    %c128_i32 = arith.constant 128 : i32
    %19 = arith.muli %arg1, %c128_i32 : i32
    %20 = vector.broadcast %19 : i32 to vector<2x128xi32>
    %21 = arith.addi %18, %20 : vector<2x128xi32>
    %c8_i32 = arith.constant 8 : i32
    %22 = vector.broadcast %c8_i32 : i32 to vector<2x128xi32>
    %23 = arith.cmpi slt, %21, %22 : vector<2x128xi32>
    %cst_10 = arith.constant -1.000000e+30 : f32
    %24 = vector.broadcast %cst_10 : f32 to vector<2x128xf32>
    %25 = arith.select %23, %17, %24 : vector<2x128xi1>, vector<2x128xf32>
    %c0_11 = arith.constant 0 : index
    %c0_12 = arith.constant 0 : index
    %26 = vector.load %arg7[%c0_11, %c0_12] : memref<2x1xf32, #tpu.memory_space<vmem>>, vector<2x1xf32>
    %cst_13 = arith.constant dense<0xFF800000> : vector<2xf32>
    %27 = vector.multi_reduction <maximumf>, %25, %cst_13 [1] : vector<2x128xf32> to vector<2xf32>
    %28 = vector.shape_cast %27 : vector<2xf32> to vector<2x1xf32>
    %29 = arith.maximumf %26, %28 : vector<2x1xf32>
    %30 = arith.subf %26, %29 : vector<2x1xf32>
    %31 = math.exp %30 : vector<2x1xf32>
    %32 = vector.broadcast %29 : vector<2x1xf32> to vector<2x128xf32>
    %33 = arith.subf %25, %32 : vector<2x128xf32>
    %34 = math.exp %33 : vector<2x128xf32>
    %c0_14 = arith.constant 0 : index
    %c0_15 = arith.constant 0 : index
    %35 = vector.load %arg8[%c0_14, %c0_15] : memref<2x1xf32, #tpu.memory_space<vmem>>, vector<2x1xf32>
    %36 = arith.mulf %31, %35 : vector<2x1xf32>
    %cst_16 = arith.constant dense<0.000000e+00> : vector<2xf32>
    %37 = vector.multi_reduction <add>, %34, %cst_16 [1] : vector<2x128xf32> to vector<2xf32>
    %38 = vector.shape_cast %37 : vector<2xf32> to vector<2x1xf32>
    %39 = arith.addf %36, %38 : vector<2x1xf32>
    %c0_17 = arith.constant 0 : index
    %c0_18 = arith.constant 0 : index
    %40 = vector.load %arg8[%c0_17, %c0_18] : memref<2x1xf32, #tpu.memory_space<vmem>>, vector<2x1xf32>
    tpu.vector_store %arg8[%c0_17, %c0_18], %39 {strides = array<i32>} : memref<2x1xf32, #tpu.memory_space<vmem>>, vector<2x1xf32>,
    %c0_19 = arith.constant 0 : index
    %c0_20 = arith.constant 0 : index
    %41 = vector.load %arg7[%c0_19, %c0_20] : memref<2x1xf32, #tpu.memory_space<vmem>>, vector<2x1xf32>
    tpu.vector_store %arg7[%c0_19, %c0_20], %29 {strides = array<i32>} : memref<2x1xf32, #tpu.memory_space<vmem>>, vector<2x1xf32>,
    %c0_i32_21 = arith.constant 0 : i32
    %42 = arith.cmpi sgt, %arg1, %c0_i32_21 : i32
    %43 = arith.extui %42 : i1 to i32
    %c0_i32_22 = arith.constant 0 : i32
    %44 = arith.cmpi ne, %43, %c0_i32_22 : i32
    scf.if %44 {
      %c0_27 = arith.constant 0 : index
      %c0_28 = arith.constant 0 : index
      %52 = vector.load %arg6[%c0_27, %c0_28] : memref<2x128xf32, #tpu.memory_space<vmem>>, vector<2x128xf32>
      %53 = vector.broadcast %31 : vector<2x1xf32> to vector<2x128xf32>
      %54 = arith.mulf %52, %53 : vector<2x128xf32>
      %c0_29 = arith.constant 0 : index
      %c0_30 = arith.constant 0 : index
      %55 = vector.load %arg6[%c0_29, %c0_30] : memref<2x128xf32, #tpu.memory_space<vmem>>, vector<2x128xf32>
      tpu.vector_store %arg6[%c0_29, %c0_30], %54 {strides = array<i32>} : memref<2x128xf32, #tpu.memory_space<vmem>>, vector<2x128xf32>,
    } else {
    }
    %c128_i32_23 = arith.constant 128 : i32
    %45 = arith.muli %arg1, %c128_i32_23 : i32
    %46 = tpu.assume_multiple %45, 128 : i32
    %c0_24 = arith.constant 0 : index
    %47 = arith.index_cast %46 : i32 to index
    %48 = vector.load %arg6[%c0_24, %47] : memref<2x128xf32, #tpu.memory_space<vmem>>, vector<2x128xf32>
    tpu.vector_store %arg6[%c0_24, %47], %34 {strides = array<i32>} : memref<2x128xf32, #tpu.memory_space<vmem>>, vector<2x128xf32>,
    %c0_i32_25 = arith.constant 0 : i32
    %49 = arith.cmpi eq, %arg1, %c0_i32_25 : i32
    %50 = arith.extui %49 : i1 to i32
    %c0_i32_26 = arith.constant 0 : i32
    %51 = arith.cmpi ne, %50, %c0_i32_26 : i32
    scf.if %51 {
      %c0_27 = arith.constant 0 : index
      %c0_28 = arith.constant 0 : index
      %52 = vector.load %arg8[%c0_27, %c0_28] : memref<2x1xf32, #tpu.memory_space<vmem>>, vector<2x1xf32>
      %c0_29 = arith.constant 0 : index
      %c0_30 = arith.constant 0 : index
      %53 = vector.load %arg6[%c0_29, %c0_30] : memref<2x128xf32, #tpu.memory_space<vmem>>, vector<2x128xf32>
      %54 = vector.broadcast %52 : vector<2x1xf32> to vector<2x128xf32>
      %55 = arith.divf %53, %54 : vector<2x128xf32>
      %c0_31 = arith.constant 0 : index
      %c0_32 = arith.constant 0 : index
      %56 = vector.load %arg6[%c0_31, %c0_32] : memref<2x128xf32, #tpu.memory_space<vmem>>, vector<2x128xf32>
      tpu.vector_store %arg6[%c0_31, %c0_32], %55 {strides = array<i32>} : memref<2x128xf32, #tpu.memory_space<vmem>>, vector<2x128xf32>,
    } else {
    }
    return
  }
  func.func @transform_0(%arg0: i32, %arg1: i32) -> (i32, i32, i32) {
    %c0_i32 = arith.constant 0 : i32
    %c0_i32_0 = arith.constant 0 : i32
    return %arg0, %arg1, %c0_i32 : i32, i32, i32
  }
  func.func @transform_1(%arg0: i32, %arg1: i32) -> (i32, i32) {
    %c0_i32 = arith.constant 0 : i32
    %c0_i32_0 = arith.constant 0 : i32
    return %arg0, %c0_i32 : i32, i32
  }
  func.func @transform_2(%arg0: i32, %arg1: i32) -> (i32, i32) {
    %c0_i32 = arith.constant 0 : i32
    %c0_i32_0 = arith.constant 0 : i32
    %c0_i32_1 = arith.constant 0 : i32
    return %c0_i32, %c0_i32_0 : i32, i32
  }
  func.func @transform_3(%arg0: i32, %arg1: i32) -> (i32, i32) {
    %c0_i32 = arith.constant 0 : i32
    %c0_i32_0 = arith.constant 0 : i32
    %c0_i32_1 = arith.constant 0 : i32
    return %c0_i32, %c0_i32_0 : i32, i32
  }
  func.func @transform_4(%arg0: i32, %arg1: i32) -> (i32, i32) {
    %c0_i32 = arith.constant 0 : i32
    %c0_i32_0 = arith.constant 0 : i32
    return %arg0, %c0_i32 : i32, i32
  }
}

</mosaic_0001>

<bundles_post_ra>
// kernel: tpu_custom_call.1
= control target key start
LH: loop header
LB: loop body
LE: loop exit
PB: predicated region body
PF: predicated region fallthrough
CT: control target
= control target key end

     0   :  { %9 = vsyncpa [#allocation5], 0  ;;  %s1380_s0 = inlined_call_operand.hbm [shape: f32[2,128,128], index: 0, kind: input, shape index: {}]   ;;  %s1381_s1 = inlined_call_operand.hbm [shape: f32[2,128], index: 1, kind: input, shape index: {}]   ;;  %s1382_s2 = inlined_call_operand.hbm [shape: f32[128,128], index: 2, kind: input, shape index: {}]   ;;  %s1383_s3 = inlined_call_operand.vmem [shape: f32[1,128], index: 3, kind: input, shape index: {}]   ;;  %s1384_s4 = inlined_call_operand.hbm [shape: f32[2,128], index: 4, kind: output, shape index: {}]  }
   0x1   :  { %10 = vsyncpa [#allocation8], 0 }
   0x2   :  { %11 = vsyncpa [#allocation6], 0  ;;  %s1171_s15 = smov [#allocation7]   ;;  %s1172_s17 = smov [#allocation4]  }
   0x3   :  { %s30_s16 = sshll.u32 %s1171_s15, 4  ;;  %s17_s18 = sshll.u32 %s1172_s17, 4  ;;  %s31_s16 = int_to_ptr.vmem [resolvable:$true] %s30_s16  ;;  %s18_s18 = int_to_ptr.vmem [resolvable:$true] %s17_s18 }
   0x4   :  { %s1093_s19 = scalar_lea.vmem %s31_s16, 32  ;;  %p1098_p1 = scmp.lt.s32.totalorder %s31_s16, %s31_s16 }
   0x5   :  { %p1094_p0 = scmp.ne.s32.totalorder %s31_s16, %s1093_s19  ;;  %p1099_p2 = scmp.lt.s32.totalorder %s1093_s19, %s1093_s19 }
   0x7   :  { %p1100_p3 = por %p1099_p2, %p1098_p1 }
   0x9   :  { %p1101_p4 = pnand %p1100_p3, %p1094_p0 }
   0xb   :  { %1104 = shalt.err (!%p1101_p4)
}
   0xc   :  { %33 = dma.hbm_to_vmem [thread:$0]  %s1381_s1, 32, %s31_s16, [#allocation8]  }
   0xd   :  { %s1113_s22 = scalar_lea.vmem %s18_s18, 4096  ;;  %p1118_p6 = scmp.lt.s32.totalorder %s18_s18, %s18_s18 }
   0xe   :  { %p1114_p5 = scmp.ne.s32.totalorder %s18_s18, %s1113_s22  ;;  %p1119_p7 = scmp.lt.s32.totalorder %s1113_s22, %s1113_s22 }
  0x10   :  { %p1120_p8 = por %p1119_p7, %p1118_p6 }
  0x12   :  { %p1121_p9 = pnand %p1120_p8, %p1114_p5 }
  0x14   :  { %1124 = shalt.err (!%p1121_p9)
}
  0x15   :  { %s1173_s23 = smov 128   ;;  %s1174_s24 = smov 8  }
  0x16   :  { %23 = dma.hbm_to_vmem [thread:$0]  %s1380_s0, 4096, %s18_s18, [#allocation5], %s1173_s23, %s1173_s23, %s1174_s24  }
  0x17   :  { %s1175_s27 = smov [#allocation9]  }
  0x18   :  { %s39_s28 = sshll.u32 %s1175_s27, 4  ;;  %s40_s28 = int_to_ptr.vmem [resolvable:$true] %s39_s28 }
  0x19   :  { %s1133_s29 = scalar_lea.vmem %s40_s28, 2048  ;;  %p1138_p11 = scmp.lt.s32.totalorder %s40_s28, %s40_s28 }
  0x1a   :  { %p1134_p10 = scmp.ne.s32.totalorder %s40_s28, %s1133_s29  ;;  %p1139_p12 = scmp.lt.s32.totalorder %s1133_s29, %s1133_s29 }
  0x1c   :  { %p1140_p13 = por %p1139_p12, %p1138_p11 }
  0x1e   :  { %p1141_p0 = pnand %p1140_p13, %p1134_p10 }
  0x20   :  { %1144 = shalt.err (!%p1141_p0)
}
  0x21   :  { %45 = dma.hbm_to_vmem [thread:$0]  %s1382_s2, 2048, %s40_s28, [#allocation8], %s1173_s23, %s1173_s23, %s1174_s24  }
  0x22   :  { %1165 = dma.done.wait [#allocation5], 4096  }
  0x23   :  { %1166 = vsyncadd [#allocation5], 4294963200 }
  0x24   :  { %1167 = dma.done.wait [#allocation8], 2080  }
  0x25   :  { %1168 = vsyncadd [#allocation8], 4294965216  ;;  %v112_v0 = vld [vmem:[#allocation9 + $0x78] sm:$0xff]  ;;  %v111_v1 = vld [vmem:[#allocation9 + $0x70] sm:$0xff]  ;;  %v1176_v48 = vmov 1966171168   ;;  %v351_v50 = vlaneseq }
  0x26   :  { %891 = vmatprep.subr.mxu0 %v112_v0  ;;  %971 = vmatprep.subr.mxu1 %v112_v0  ;;  %v110_v2 = vld [vmem:[#allocation9 + $0x68] sm:$0xff]  ;;  %v109_v3 = vld [vmem:[#allocation9 + $0x60] sm:$0xff]  ;;  %v108_v4 = vld [vmem:[#allocation9 + $0x58] sm:$0xff]  ;;  %v349_v49 = vunpack.c.l.s4 %v1176_v48  ;;  %vm61_vm0 = vcmask 1024   ;;  %vm586_vm1 = vcmask 130112   ;;  %vm593_vm2 = vcmask 195712  }
  0x27   :  { %892 = vmatpush3.msra.mxu0 %v112_v0  ;;  %987 = vmatpush3.msra.mxu1 %v112_v0  ;;  %v107_v5 = vld [vmem:[#allocation9 + $0x50] sm:$0xff]  ;;  %v106_v6 = vld [vmem:[#allocation9 + $0x48] sm:$0xff]  ;;  %v105_v7 = vld [vmem:[#allocation9 + $0x40] sm:$0xff]  ;;  %v1216_v52 = vshrl.u32 %v351_v50, 7  ;;  %vm600_vm3 = vcmask 261312   ;;  %vm607_vm4 = vcmask 326912  }
  0x28   :  { %893 = vmatprep.subr.mxu0 %v111_v1  ;;  %972 = vmatprep.subr.mxu1 %v111_v1  ;;  %v104_v8 = vld [vmem:[#allocation9 + $0x38] sm:$0xff]  ;;  %v103_v9 = vld [vmem:[#allocation9 + $0x30] sm:$0xff]  ;;  %v102_v10 = vld [vmem:[#allocation9 + $0x28] sm:$0xff]  ;;  %v350_v51 = vunpack.c.0.s8 %v349_v49  ;;  %vm614_vm5 = vcmask 392512   ;;  %vm621_vm6 = vcmask 458112   ;;  %vm628_vm7 = vcmask 523712  }
  0x29   :  { %894 = vmatpush3.msra.mxu0 %v111_v1  ;;  %988 = vmatpush3.msra.mxu1 %v111_v1  ;;  %v101_v11 = vld [vmem:[#allocation9 + $0x20] sm:$0xff]  ;;  %v100_v12 = vld [vmem:[#allocation9 + $0x18] sm:$0xff]  ;;  %v99_v13 = vld [vmem:[#allocation9 + $0x10] sm:$0xff]  ;;  %v364_v57 = vsub.s32 0, %v1216_v52  ;;  %vm635_vm8 = vcmask 589312   ;;  %vm642_vm9 = vcmask 654912  }
  0x2a   :  { %895 = vmatprep.subr.mxu0 %v110_v2  ;;  %973 = vmatprep.subr.mxu1 %v110_v2  ;;  %v98_v14 = vld [vmem:[#allocation9 + $0x8] sm:$0xff]  ;;  %v97_v15 = vld [vmem:[#allocation9] sm:$0xff]  ;;  %v68_v22 = vld [vmem:[#allocation4 + $0x18] sm:$0xff]  ;;  %v353_v54 = vsub.s32 %v350_v51, %v1216_v52  ;;  %vm649_vm10 = vcmask 720512   ;;  %vm656_vm11 = vcmask 786112   ;;  %vm663_vm12 = vcmask 851712  }
  0x2b   :  { %896 = vmatpush3.msra.mxu0 %v110_v2  ;;  %989 = vmatpush3.msra.mxu1 %v110_v2  ;;  %v65_v16 = vld [vmem:[#allocation4] sm:$0xff]  ;;  %v66_v18 = vld [vmem:[#allocation4 + $0x8] sm:$0xff]  ;;  %v67_v20 = vld [vmem:[#allocation4 + $0x10] sm:$0xff]  ;;  %vm670_vm13 = vcmask 917312   ;;  %vm677_vm14 = vcmask 982912   ;;  %vm684_vm15 = vcmask 1048512  }
  0x2c   :  { %897 = vmatprep.subr.mxu0 %v109_v3  ;;  %974 = vmatprep.subr.mxu1 %v109_v3  ;;  %v81_v17 = vld [vmem:[#allocation4 + $0x80] sm:$0xff]  ;;  %v82_v19 = vld [vmem:[#allocation4 + $0x88] sm:$0xff]  ;;  %v83_v21 = vld [vmem:[#allocation4 + $0x90] sm:$0xff] }
  0x2d   :  { %898 = vmatpush3.msra.mxu0 %v109_v3  ;;  %990 = vmatpush3.msra.mxu1 %v109_v3  ;;  %v84_v23 = vld [vmem:[#allocation4 + $0x98] sm:$0xff]  ;;  %v69_v24 = vld [vmem:[#allocation4 + $0x20] sm:$0xff]  ;;  %v70_v26 = vld [vmem:[#allocation4 + $0x28] sm:$0xff] }
  0x2e   :  { %899 = vmatprep.subr.mxu0 %v108_v4  ;;  %975 = vmatprep.subr.mxu1 %v108_v4  ;;  %v85_v25 = vld [vmem:[#allocation4 + $0xa0] sm:$0xff]  ;;  %v86_v27 = vld [vmem:[#allocation4 + $0xa8] sm:$0xff]  ;;  %v71_v28 = vld [vmem:[#allocation4 + $0x30] sm:$0xff] }
  0x2f   :  { %900 = vmatpush3.msra.mxu0 %v108_v4  ;;  %991 = vmatpush3.msra.mxu1 %v108_v4  ;;  %v87_v29 = vld [vmem:[#allocation4 + $0xb0] sm:$0xff]  ;;  %v72_v30 = vld [vmem:[#allocation4 + $0x38] sm:$0xff]  ;;  %v73_v32 = vld [vmem:[#allocation4 + $0x40] sm:$0xff] }
  0x30   :  { %901 = vmatprep.subr.mxu0 %v107_v5  ;;  %976 = vmatprep.subr.mxu1 %v107_v5  ;;  %v88_v31 = vld [vmem:[#allocation4 + $0xb8] sm:$0xff]  ;;  %v89_v33 = vld [vmem:[#allocation4 + $0xc0] sm:$0xff]  ;;  %v74_v34 = vld [vmem:[#allocation4 + $0x48] sm:$0xff] }
  0x31   :  { %902 = vmatpush3.msra.mxu0 %v107_v5  ;;  %992 = vmatpush3.msra.mxu1 %v107_v5  ;;  %v90_v35 = vld [vmem:[#allocation4 + $0xc8] sm:$0xff]  ;;  %v75_v36 = vld [vmem:[#allocation4 + $0x50] sm:$0xff]  ;;  %v76_v38 = vld [vmem:[#allocation4 + $0x58] sm:$0xff] }
  0x32   :  { %903 = vmatprep.subr.mxu0 %v106_v6  ;;  %977 = vmatprep.subr.mxu1 %v106_v6  ;;  %v91_v37 = vld [vmem:[#allocation4 + $0xd0] sm:$0xff]  ;;  %v92_v39 = vld [vmem:[#allocation4 + $0xd8] sm:$0xff]  ;;  %v77_v40 = vld [vmem:[#allocation4 + $0x60] sm:$0xff] }
  0x33   :  { %904 = vmatpush3.msra.mxu0 %v106_v6  ;;  %993 = vmatpush3.msra.mxu1 %v106_v6  ;;  %v93_v41 = vld [vmem:[#allocation4 + $0xe0] sm:$0xff]  ;;  %v78_v42 = vld [vmem:[#allocation4 + $0x68] sm:$0xff]  ;;  %v79_v44 = vld [vmem:[#allocation4 + $0x70] sm:$0xff] }
  0x34   :  { %905 = vmatprep.subr.mxu0 %v105_v7  ;;  %978 = vmatprep.subr.mxu1 %v105_v7  ;;  %v94_v43 = vld [vmem:[#allocation4 + $0xe8] sm:$0xff]  ;;  %v95_v45 = vld [vmem:[#allocation4 + $0xf0] sm:$0xff]  ;;  %v80_v46 = vld [vmem:[#allocation4 + $0x78] sm:$0xff] }
  0x35   :  { %906 = vmatpush3.msra.mxu0 %v105_v7  ;;  %994 = vmatpush3.msra.mxu1 %v105_v7  ;;  %v96_v47 = vld [vmem:[#allocation4 + $0xf8] sm:$0xff]  ;;  %v841_v53 = vld.sshfl [vmem:[#allocation7] sm:$0x11 pattern:$0x75316420] }
  0x36   :  { %907 = vmatprep.subr.mxu0 %v104_v8  ;;  %979 = vmatprep.subr.mxu1 %v104_v8  ;;  %v347_v55 = vcombine.high %v841_v53, %v841_v53  ;;  %v354_v56 = vrot.slane %v841_v53, %v353_v54 }
  0x37   :  { %908 = vmatpush3.msra.mxu0 %v104_v8  ;;  %995 = vmatpush3.msra.mxu1 %v104_v8 }
  0x38   :  { %909 = vmatprep.subr.mxu0 %v103_v9  ;;  %980 = vmatprep.subr.mxu1 %v103_v9  ;;  %v361_v58 = vrot.slane %v347_v55, %v353_v54  ;;  %v1220_v59 = vrot.slane %v354_v56, %v364_v57 }
  0x39   :  { %910 = vmatpush3.msra.mxu0 %v103_v9  ;;  %996 = vmatpush3.msra.mxu1 %v103_v9 }
  0x3a   :  { %911 = vmatprep.subr.mxu0 %v102_v10  ;;  %981 = vmatprep.subr.mxu1 %v102_v10  ;;  %v1222_v60 = vrot.slane %v361_v58, %v364_v57 }
  0x3b   :  { %912 = vmatpush3.msra.mxu0 %v102_v10  ;;  %997 = vmatpush3.msra.mxu1 %v102_v10 }
  0x3c   :  { %913 = vmatprep.subr.mxu0 %v101_v11  ;;  %982 = vmatprep.subr.mxu1 %v101_v11 }
  0x3d   :  { %914 = vmatpush3.msra.mxu0 %v101_v11  ;;  %998 = vmatpush3.msra.mxu1 %v101_v11 }
  0x3e   :  { %915 = vmatprep.subr.mxu0 %v100_v12  ;;  %983 = vmatprep.subr.mxu1 %v100_v12 }
  0x3f   :  { %916 = vmatpush3.msra.mxu0 %v100_v12  ;;  %999 = vmatpush3.msra.mxu1 %v100_v12 }
  0x40   :  { %917 = vmatprep.subr.mxu0 %v99_v13  ;;  %984 = vmatprep.subr.mxu1 %v99_v13 }
  0x41   :  { %918 = vmatpush3.msra.mxu0 %v99_v13  ;;  %1000 = vmatpush3.msra.mxu1 %v99_v13 }
  0x42   :  { %919 = vmatprep.subr.mxu0 %v98_v14  ;;  %985 = vmatprep.subr.mxu1 %v98_v14 }
  0x43   :  { %920 = vmatpush3.msra.mxu0 %v98_v14  ;;  %1001 = vmatpush3.msra.mxu1 %v98_v14 }
  0x44   :  { %921 = vmatprep.subr.mxu0 %v97_v15  ;;  %986 = vmatprep.subr.mxu1 %v97_v15 }
  0x45   :  { %922 = vmatpush3.msra.mxu0 %v97_v15  ;;  %1002 = vmatpush3.msra.mxu1 %v97_v15 }
  0x46   :  { %923 = vmatprep.mubr.f32.mxu0 %v65_v16  ;;  %947 = vmatprep.mubr.f32.mxu1 %v81_v17 }
  0x47   :  { %924 = vmatmul.mubr.f32.vlgmr.msra.gmra.mxu0 %v66_v18  ;;  %948 = vmatmul.mubr.f32.vlgmr.msra.gmra.mxu1 %v82_v19  ;;  %v1237_v18 = vld [vmem:[%s1383_s3] ss:$0 sm:$0xff]  ;;  %s1180_s3 = smov [#allocation10]  }
  0x48   :  { %926 = vmatprep.mubr.f32.mxu0 %v67_v20  ;;  %950 = vmatprep.mubr.f32.mxu1 %v83_v21  ;;  %s830_s5 = sshll.u32 %s1180_s3, 4  ;;  %s831_s5 = int_to_ptr.vmem [resolvable:$true] %s830_s5 }
  0x49   :  { %s1145_s6 = scalar_lea.vmem %s831_s5, 32  ;;  %p1150_p2 = scmp.lt.s32.totalorder %s831_s5, %s831_s5 }
  0x4a   :  { %p1146_p1 = scmp.ne.s32.totalorder %s831_s5, %s1145_s6  ;;  %p1151_p3 = scmp.lt.s32.totalorder %s1145_s6, %s1145_s6 }
  0x4b   :  { %927 = vmatmul.mubr.f32.gmra.mxu0 %v68_v22  ;;  %951 = vmatmul.mubr.f32.gmra.mxu1 %v84_v23 }
  0x4c   :  { %929 = vmatprep.mubr.f32.mxu0 %v69_v24  ;;  %953 = vmatprep.mubr.f32.mxu1 %v85_v25  ;;  %p1152_p4 = por %p1151_p3, %p1150_p2 }
  0x4e   :  { %p1153_p5 = pnand %p1152_p4, %p1146_p1 }
  0x4f   :  { %930 = vmatmul.mubr.f32.gmra.mxu0 %v70_v26  ;;  %954 = vmatmul.mubr.f32.gmra.mxu1 %v86_v27 }
  0x50   :  { %932 = vmatprep.mubr.f32.mxu0 %v71_v28  ;;  %956 = vmatprep.mubr.f32.mxu1 %v87_v29 }
  0x53   :  { %933 = vmatmul.mubr.f32.gmra.mxu0 %v72_v30  ;;  %957 = vmatmul.mubr.f32.gmra.mxu1 %v88_v31 }
  0x54   :  { %935 = vmatprep.mubr.f32.mxu0 %v73_v32  ;;  %959 = vmatprep.mubr.f32.mxu1 %v89_v33 }
  0x57   :  { %936 = vmatmul.mubr.f32.gmra.mxu0 %v74_v34  ;;  %960 = vmatmul.mubr.f32.gmra.mxu1 %v90_v35 }
  0x58   :  { %938 = vmatprep.mubr.f32.mxu0 %v75_v36  ;;  %962 = vmatprep.mubr.f32.mxu1 %v91_v37 }
  0x5b   :  { %939 = vmatmul.mubr.f32.gmra.mxu0 %v76_v38  ;;  %963 = vmatmul.mubr.f32.gmra.mxu1 %v92_v39 }
  0x5c   :  { %941 = vmatprep.mubr.f32.mxu0 %v77_v40  ;;  %965 = vmatprep.mubr.f32.mxu1 %v93_v41 }
  0x5f   :  { %942 = vmatmul.mubr.f32.gmra.mxu0 %v78_v42  ;;  %966 = vmatmul.mubr.f32.gmra.mxu1 %v94_v43 }
  0x60   :  { %944 = vmatprep.mubr.f32.mxu0 %v79_v44  ;;  %968 = vmatprep.mubr.f32.mxu1 %v95_v45 }
  0x63   :  { %945 = vmatmul.mubr.f32.gmra.mxu0 %v80_v46  ;;  %969 = vmatmul.mubr.f32.gmra.mxu1 %v96_v47 }
 0x107   :  { %v925_v61 = vpop.f32.mrf.mxu0  ;;  %v949_v62 = vpop.f32.mrf.mxu1 }
 0x108   :  { %v373_v63 = vadd.f32 %v925_v61, %v1220_v59  ;;  %v389_v0 = vadd.f32 %v949_v62, %v1222_v60 }
 0x109   :  { %v179_v1 = vpop.f32.mrf.mxu0  ;;  %v259_v2 = vpop.f32.mrf.mxu1 }
 0x10a   :  { %1015 = vtanh.f32 %v373_v63  ;;  %v372_v3 = vadd.f32 %v1220_v59, %v179_v1  ;;  %v388_v4 = vadd.f32 %v1222_v60, %v259_v2 }
 0x10b   :  { %1017 = vtanh.f32 %v389_v0  ;;  %v928_v5 = vpop.f32.mrf.mxu0  ;;  %v952_v6 = vpop.f32.mrf.mxu1 }
 0x10c   :  { %1019 = vtanh.f32 %v372_v3  ;;  %v375_v7 = vadd.f32 %v928_v5, %v1220_v59  ;;  %v391_v8 = vadd.f32 %v952_v6, %v1222_v60 }
 0x10d   :  { %1021 = vtanh.f32 %v388_v4  ;;  %v189_v9 = vpop.f32.mrf.mxu0  ;;  %v269_v10 = vpop.f32.mrf.mxu1 }
 0x10e   :  { %1023 = vtanh.f32 %v375_v7  ;;  %v374_v11 = vadd.f32 %v1220_v59, %v189_v9  ;;  %v390_v12 = vadd.f32 %v1222_v60, %v269_v10 }
 0x10f   :  { %1025 = vtanh.f32 %v391_v8  ;;  %v931_v13 = vpop.f32.mrf.mxu0  ;;  %v955_v15 = vpop.f32.mrf.mxu1 }
 0x110   :  { %v377_v14 = vadd.f32 %v931_v13, %v1220_v59  ;;  %v393_v16 = vadd.f32 %v955_v15, %v1222_v60  ;;  %1027 = vtanh.f32 %v374_v11 }
 0x111   :  { %1029 = vtanh.f32 %v390_v12  ;;  %v199_v17 = vpop.f32.mrf.mxu0  ;;  %v279_v19 = vpop.f32.mrf.mxu1 }
 0x112   :  { %1031 = vtanh.f32 %v377_v14  ;;  %v376_v22 = vadd.f32 %v1220_v59, %v199_v17  ;;  %v392_v25 = vadd.f32 %v1222_v60, %v279_v19 }
 0x113   :  { %1033 = vtanh.f32 %v393_v16  ;;  %v934_v27 = vpop.f32.mrf.mxu0  ;;  %v958_v30 = vpop.f32.mrf.mxu1 }
 0x114   :  { %v379_v29 = vadd.f32 %v934_v27, %v1220_v59  ;;  %v395_v32 = vadd.f32 %v958_v30, %v1222_v60  ;;  %1035 = vtanh.f32 %v376_v22 }
 0x115   :  { %1037 = vtanh.f32 %v392_v25  ;;  %v209_v36 = vpop.f32.mrf.mxu0  ;;  %v289_v37 = vpop.f32.mrf.mxu1 }
 0x116   :  { %1039 = vtanh.f32 %v379_v29  ;;  %v378_v40 = vadd.f32 %v1220_v59, %v209_v36  ;;  %v394_v42 = vadd.f32 %v1222_v60, %v289_v37 }
 0x117   :  { %v1016_v20 = vpop.eup %1015  ;;  %1041 = vtanh.f32 %v395_v32  ;;  %v937_v43 = vpop.f32.mrf.mxu0 }
 0x118   :  { %v1018_v21 = vpop.eup %1017  ;;  %v444_v23 = vmul.f32 %v1016_v20, %v1237_v18  ;;  %v381_v45 = vadd.f32 %v937_v43, %v1220_v59  ;;  %v961_v46 = vpop.f32.mrf.mxu1  ;;  %1043 = vtanh.f32 %v378_v40 }
 0x119   :  { %v1020_v24 = vpop.eup %1019  ;;  %v460_v26 = vmul.f32 %v1018_v21, %v1237_v18  ;;  %v397_v48 = vadd.f32 %v961_v46, %v1222_v60  ;;  %1045 = vtanh.f32 %v394_v42  ;;  %v219_v54 = vpop.f32.mrf.mxu0 }
 0x11a   :  { %v1022_v28 = vpop.eup %1021  ;;  %477 = vadd.xlane.f32.xlu0 %v444_v23  ;;  %v443_v34 = vmul.f32 %v1020_v24, %v1237_v18  ;;  %1047 = vtanh.f32 %v381_v45  ;;  %v299_v55 = vpop.f32.mrf.mxu1  ;;  %v380_v58 = vadd.f32 %v1220_v59, %v219_v54 }
 0x11b   :  { %v1024_v31 = vpop.eup %1023  ;;  %509 = vadd.xlane.f32.xlu1 %v460_v26  ;;  %v459_v35 = vmul.f32 %v1022_v28, %v1237_v18  ;;  %1049 = vtanh.f32 %v397_v48  ;;  %v396_v62 = vadd.f32 %v1222_v60, %v299_v55  ;;  %v940_v63 = vpop.f32.mrf.mxu0 }
 0x11c   :  { %v1026_v33 = vpop.eup %1025  ;;  %v446_v38 = vmul.f32 %v1024_v31, %v1237_v18  ;;  %v383_v1 = vadd.f32 %v940_v63, %v1220_v59  ;;  %v964_v2 = vpop.f32.mrf.mxu1  ;;  %1051 = vtanh.f32 %v380_v58 }
 0x11d   :  { %v462_v39 = vmul.f32 %v1026_v33, %v1237_v18  ;;  %v1028_v41 = vpop.eup %1027  ;;  %v399_v4 = vadd.f32 %v964_v2, %v1222_v60  ;;  %1053 = vtanh.f32 %v396_v62  ;;  %v229_v8 = vpop.f32.mrf.mxu0 }
 0x11e   :  { %475 = vadd.xlane.f32.xlu0 %v443_v34  ;;  %v1030_v44 = vpop.eup %1029  ;;  %v445_v51 = vmul.f32 %v1028_v41, %v1237_v18  ;;  %1055 = vtanh.f32 %v383_v1  ;;  %v309_v9 = vpop.f32.mrf.mxu1  ;;  %v382_v13 = vadd.f32 %v1220_v59, %v229_v8 }
 0x11f   :  { %507 = vadd.xlane.f32.xlu1 %v459_v35  ;;  %v1032_v47 = vpop.eup %1031  ;;  %v461_v53 = vmul.f32 %v1030_v44, %v1237_v18  ;;  %1057 = vtanh.f32 %v399_v4  ;;  %v943_v12 = vpop.f32.mrf.mxu0  ;;  %v398_v16 = vadd.f32 %v1222_v60, %v309_v9 }
 0x120   :  { %v1034_v49 = vpop.eup %1033  ;;  %v448_v56 = vmul.f32 %v1032_v47, %v1237_v18  ;;  %v967_v14 = vpop.f32.mrf.mxu1  ;;  %v385_v19 = vadd.f32 %v943_v12, %v1220_v59  ;;  %1059 = vtanh.f32 %v382_v13 }
 0x121   :  { %v464_v57 = vmul.f32 %v1034_v49, %v1237_v18  ;;  %v1036_v61 = vpop.eup %1035  ;;  %v401_v21 = vadd.f32 %v967_v14, %v1222_v60  ;;  %v239_v22 = vpop.f32.mrf.mxu0  ;;  %1061 = vtanh.f32 %v398_v16 }
 0x122   :  { %481 = vadd.xlane.f32.xlu0 %v446_v38  ;;  %v1038_v0 = vpop.eup %1037  ;;  %v447_v6 = vmul.f32 %v1036_v61, %v1237_v18  ;;  %v319_v25 = vpop.f32.mrf.mxu1  ;;  %1063 = vtanh.f32 %v385_v19  ;;  %v384_v31 = vadd.f32 %v1220_v59, %v239_v22 }
 0x123   :  { %513 = vadd.xlane.f32.xlu1 %v462_v39  ;;  %v1040_v3 = vpop.eup %1039  ;;  %v463_v7 = vmul.f32 %v1038_v0, %v1237_v18  ;;  %v946_v27 = vpop.f32.mrf.mxu0  ;;  %1065 = vtanh.f32 %v401_v21  ;;  %v400_v33 = vadd.f32 %v1222_v60, %v319_v25 }
 0x124   :  { %v1042_v5 = vpop.eup %1041  ;;  %v450_v10 = vmul.f32 %v1040_v3, %v1237_v18  ;;  %v970_v29 = vpop.f32.mrf.mxu1  ;;  %1067 = vtanh.f32 %v384_v31  ;;  %v387_v45 = vadd.f32 %v946_v27, %v1220_v59 }
 0x125   :  { %v466_v11 = vmul.f32 %v1042_v5, %v1237_v18  ;;  %v1044_v15 = vpop.eup %1043  ;;  %v249_v34 = vpop.f32.mrf.mxu0  ;;  %1069 = vtanh.f32 %v400_v33  ;;  %v403_v47 = vadd.f32 %v970_v29, %v1222_v60  ;;  %v1177_v5 = vmov -1e+30  }
 0x126   :  { %479 = vadd.xlane.f32.xlu0 %v445_v51  ;;  %v1046_v17 = vpop.eup %1045  ;;  %v449_v24 = vmul.f32 %v1044_v15, %v1237_v18  ;;  %v329_v36 = vpop.f32.mrf.mxu1  ;;  %v386_v39 = vadd.f32 %v1220_v59, %v249_v34  ;;  %62 = vst.msk [vmem:[#allocation2] sm:$0x3] %vm61_vm0, %v1177_v5 }
 0x127   :  { %511 = vadd.xlane.f32.xlu1 %v461_v53  ;;  %v1048_v20 = vpop.eup %1047  ;;  %v465_v26 = vmul.f32 %v1046_v17, %v1237_v18  ;;  %v402_v41 = vadd.f32 %v1222_v60, %v329_v36  ;;  %v1299_v17 = vand.u32 127, %v351_v50 }
 0x128   :  { %v1050_v23 = vpop.eup %1049  ;;  %v452_v28 = vmul.f32 %v1048_v20, %v1237_v18  ;;  %1071 = vtanh.f32 %v386_v39 }
 0x129   :  { %v468_v30 = vmul.f32 %v1050_v23, %v1237_v18  ;;  %v1052_v32 = vpop.eup %1051  ;;  %1073 = vtanh.f32 %v402_v41  ;;  %v588_v21 = vadd.s32 4294967280, %v1299_v17  ;;  %v581_v22 = vadd.s32 4294967288, %v1299_v17 }
 0x12a   :  { %485 = vadd.xlane.f32.xlu0 %v448_v56  ;;  %v1054_v35 = vpop.eup %1053  ;;  %v451_v40 = vmul.f32 %v1052_v32, %v1237_v18  ;;  %1075 = vtanh.f32 %v387_v45  ;;  %v602_v50 = vadd.s32 4294967264, %v1299_v17  ;;  %v609_v31 = vadd.s32 4294967256, %v1299_v17 }
 0x12b   :  { %517 = vadd.xlane.f32.xlu1 %v464_v57  ;;  %v1056_v37 = vpop.eup %1055  ;;  %v467_v42 = vmul.f32 %v1054_v35, %v1237_v18  ;;  %1077 = vtanh.f32 %v403_v47  ;;  %v584_v27 = vsub.s32 %v581_v22, %v1216_v52  ;;  %v616_v36 = vadd.s32 4294967248, %v1299_v17 }
 0x12c   :  { %v1058_v38 = vpop.eup %1057  ;;  %v454_v43 = vmul.f32 %v1056_v37, %v1237_v18  ;;  %v605_v35 = vsub.s32 %v602_v50, %v1216_v52  ;;  %v623_v41 = vadd.s32 4294967240, %v1299_v17  ;;  %v630_v45 = vadd.s32 4294967232, %v1299_v17 }
 0x12d   :  { %v470_v44 = vmul.f32 %v1058_v38, %v1237_v18  ;;  %v1060_v46 = vpop.eup %1059  ;;  %v665_v50 = vadd.s32 4294967192, %v1299_v17 }
 0x12e   :  { %483 = vadd.xlane.f32.xlu0 %v447_v6  ;;  %v1062_v48 = vpop.eup %1061  ;;  %v453_v53 = vmul.f32 %v1060_v46, %v1237_v18 }
 0x12f   :  { %515 = vadd.xlane.f32.xlu1 %v463_v7  ;;  %v1064_v49 = vpop.eup %1063  ;;  %v469_v54 = vmul.f32 %v1062_v48, %v1237_v18 }
 0x130   :  { %v1066_v51 = vpop.eup %1065  ;;  %v456_v55 = vmul.f32 %v1064_v49, %v1237_v18 }
 0x131   :  { %v472_v59 = vmul.f32 %v1066_v51, %v1237_v18  ;;  %v1068_v56 = vpop.eup %1067  ;;  %v619_v51 = vsub.s32 %v616_v36, %v1216_v52 }
 0x132   :  { %489 = vadd.xlane.f32.xlu0 %v450_v10  ;;  %v1070_v60 = vpop.eup %1069  ;;  %v455_v57 = vmul.f32 %v1068_v56, %v1237_v18  ;;  %v626_v56 = vsub.s32 %v623_v41, %v1216_v52  ;;  %v679_v41 = vadd.s32 4294967176, %v1299_v17 }
 0x133   :  { %521 = vadd.xlane.f32.xlu1 %v466_v11  ;;  %v471_v61 = vmul.f32 %v1070_v60, %v1237_v18 }
 0x135   :  { %v1072_v58 = vpop.eup %1071 }
 0x136   :  { %487 = vadd.xlane.f32.xlu0 %v449_v24  ;;  %v1074_v62 = vpop.eup %1073  ;;  %v457_v63 = vmul.f32 %v1072_v58, %v1237_v18  ;;  %v579_v24 = vsub.s32 %v1299_v17, %v1216_v52  ;;  %v637_v58 = vadd.s32 4294967224, %v1299_v17 }
 0x137   :  { %519 = vadd.xlane.f32.xlu1 %v465_v26  ;;  %v1076_v0 = vpop.eup %1075  ;;  %v473_v1 = vmul.f32 %v1074_v62, %v1237_v18  ;;  %v591_v26 = vsub.s32 %v588_v21, %v1216_v52 }
 0x138   :  { %v1078_v2 = vpop.eup %1077  ;;  %v458_v3 = vmul.f32 %v1076_v0, %v1237_v18 }
 0x139   :  { %v474_v4 = vmul.f32 %v1078_v2, %v1237_v18  ;;  %v644_v2 = vadd.s32 4294967216, %v1299_v17 }
 0x13a   :  { %493 = vadd.xlane.f32.xlu0 %v452_v28  ;;  %v595_v28 = vadd.s32 4294967272, %v1299_v17 }
 0x13b   :  { %525 = vadd.xlane.f32.xlu1 %v468_v30 }
 0x13c   :  { %v598_v38 = vsub.s32 %v595_v28, %v1216_v52 }
 0x13e   :  { %491 = vadd.xlane.f32.xlu0 %v451_v40 }
 0x13f   :  { %523 = vadd.xlane.f32.xlu1 %v467_v42 }
 0x142   :  { %497 = vadd.xlane.f32.xlu0 %v454_v43 }
 0x143   :  { %529 = vadd.xlane.f32.xlu1 %v470_v44  ;;  %v612_v44 = vsub.s32 %v609_v31, %v1216_v52 }
 0x146   :  { %495 = vadd.xlane.f32.xlu0 %v453_v53 }
 0x147   :  { %527 = vadd.xlane.f32.xlu1 %v469_v54 }
 0x14a   :  { %501 = vadd.xlane.f32.xlu0 %v456_v55 }
 0x14b   :  { %533 = vadd.xlane.f32.xlu1 %v472_v59 }
 0x14e   :  { %499 = vadd.xlane.f32.xlu0 %v455_v57 }
 0x14f   :  { %531 = vadd.xlane.f32.xlu1 %v471_v61  ;;  %v633_v61 = vsub.s32 %v630_v45, %v1216_v52 }
 0x152   :  { %503 = vadd.xlane.f32.xlu0 %v457_v63 }
 0x153   :  { %535 = vadd.xlane.f32.xlu1 %v473_v1 }
 0x156   :  { %505 = vadd.xlane.f32.xlu0 %v458_v3 }
 0x157   :  { %537 = vadd.xlane.f32.xlu1 %v474_v4 }
 0x1a3   :  { %v478_v6 = vpop.xlane.xlu0 %477 }
 0x1a4   :  { %v510_v7 = vpop.xlane.xlu1 %509  ;;  %v585_v37 = vrot.slane %v478_v6, %v584_v27 }
 0x1a5   :  { %v693_v40 = vrot.slane %v510_v7, %v584_v27  ;;  %v651_v7 = vadd.s32 4294967208, %v1299_v17 }
 0x1a7   :  { %v476_v8 = vpop.xlane.xlu0 %475 }
 0x1a8   :  { %v508_v9 = vpop.xlane.xlu1 %507  ;;  %v580_v30 = vrot.slane %v476_v8, %v579_v24 }
 0x1a9   :  { %v689_v33 = vrot.slane %v508_v9, %v579_v24  ;;  %v654_v24 = vsub.s32 %v651_v7, %v1216_v52 }
 0x1aa   :  { %v587_v43 = vsel %vm586_vm1, %v585_v37, %v580_v30 }
 0x1ab   :  { %v482_v10 = vpop.xlane.xlu0 %481  ;;  %v694_v47 = vsel %vm586_vm1, %v693_v40, %v689_v33  ;;  %v672_v33 = vadd.s32 4294967184, %v1299_v17  ;;  %vm765_vm1 = vcmask 1041409  }
 0x1ac   :  { %v514_v11 = vpop.xlane.xlu1 %513  ;;  %v599_v53 = vrot.slane %v482_v10, %v598_v38  ;;  %v640_v10 = vsub.s32 %v637_v58, %v1216_v52 }
 0x1ad   :  { %v703_v59 = vrot.slane %v514_v11, %v598_v38 }
 0x1af   :  { %v480_v12 = vpop.xlane.xlu0 %479 }
 0x1b0   :  { %v512_v13 = vpop.xlane.xlu1 %511  ;;  %v592_v34 = vrot.slane %v480_v12, %v591_v26  ;;  %v658_v12 = vadd.s32 4294967200, %v1299_v17 }
 0x1b1   :  { %v698_v39 = vrot.slane %v512_v13, %v591_v26 }
 0x1b2   :  { %v594_v48 = vsel %vm593_vm2, %v592_v34, %v587_v43  ;;  %v661_v28 = vsub.s32 %v658_v12, %v1216_v52 }
 0x1b3   :  { %v1294_v14 = vpop.xlane.xlu0 %485  ;;  %v699_v54 = vsel %vm593_vm2, %v698_v39, %v694_v47  ;;  %v601_v57 = vsel %vm600_vm3, %v599_v53, %v594_v48  ;;  %v668_v39 = vsub.s32 %v665_v50, %v1216_v52  ;;  %v682_v53 = vsub.s32 %v679_v41, %v1216_v52 }
 0x1b4   :  { %v1296_v15 = vpop.xlane.xlu1 %517  ;;  %v704_v63 = vsel %vm600_vm3, %v703_v59, %v699_v54  ;;  %v613_v3 = vrot.slane %v1294_v14, %v612_v44  ;;  %vm544_vm2 = vcmp.lt.s32.totalorder %v1299_v17, 8  ;;  %vm770_vm3 = vcmask 1041408  }
 0x1b5   :  { %v713_v6 = vrot.slane %v1296_v15, %v612_v44 }
 0x1b7   :  { %v484_v16 = vpop.xlane.xlu0 %483 }
 0x1b8   :  { %v516_v18 = vpop.xlane.xlu1 %515  ;;  %v606_v49 = vrot.slane %v484_v16, %v605_v35 }
 0x1b9   :  { %v708_v55 = vrot.slane %v516_v18, %v605_v35  ;;  %v647_v18 = vsub.s32 %v644_v2, %v1216_v52 }
 0x1ba   :  { %v608_v0 = vsel %vm607_vm4, %v606_v49, %v601_v57 }
 0x1bb   :  { %v1301_v19 = vpop.xlane.xlu0 %489  ;;  %v709_v4 = vsel %vm607_vm4, %v708_v55, %v704_v63  ;;  %v615_v9 = vsel %vm614_vm5, %v613_v3, %v608_v0 }
 0x1bc   :  { %v1303_v20 = vpop.xlane.xlu1 %521  ;;  %v714_v13 = vsel %vm614_vm5, %v713_v6, %v709_v4  ;;  %v627_v21 = vrot.slane %v1301_v19, %v626_v56 }
 0x1bf   :  { %v1307_v23 = vpop.xlane.xlu0 %487 }
 0x1c0   :  { %v1311_v25 = vpop.xlane.xlu1 %519  ;;  %v620_v1 = vrot.slane %v1307_v23, %v619_v51  ;;  %v723_v23 = vrot.slane %v1303_v20, %v626_v56 }
 0x1c1   :  { %v718_v5 = vrot.slane %v1311_v25, %v619_v51 }
 0x1c2   :  { %v622_v14 = vsel %vm621_vm6, %v620_v1, %v615_v9  ;;  %v1178_v9 = vmov 0  }
 0x1c3   :  { %v1317_v29 = vpop.xlane.xlu0 %493  ;;  %v719_v15 = vsel %vm621_vm6, %v718_v5, %v714_v13  ;;  %v629_v26 = vsel %vm628_vm7, %v627_v21, %v622_v14  ;;  %1013 = vset.pattern.permute.xlu1 %v1178_v9  ;;  %1014 = vset.pattern.permute.xlu0 %v1178_v9 }
 0x1c4   :  { %v1320_v32 = vpop.xlane.xlu1 %525  ;;  %v724_v30 = vsel %vm628_vm7, %v723_v23, %v719_v15  ;;  %v641_v34 = vrot.slane %v1317_v29, %v640_v10  ;;  %v675_v29 = vsub.s32 %v672_v33, %v1216_v52 }
 0x1c5   :  { %v733_v36 = vrot.slane %v1320_v32, %v640_v10  ;;  %v1179_v10 = vmov 0.0  }
 0x1c6   :  { %63 = vst.msk [vmem:[#allocation3] sm:$0x3] %vm61_vm0, %v1179_v10  ;;  %64 = vst [vmem:[#allocation10] sm:$0x3] %v1179_v10 }
 0x1c7   :  { %v492_v42 = vpop.xlane.xlu0 %491 }
 0x1c8   :  { %v524_v46 = vpop.xlane.xlu1 %523  ;;  %v634_v16 = vrot.slane %v492_v42, %v633_v61 }
 0x1c9   :  { %v728_v22 = vrot.slane %v524_v46, %v633_v61 }
 0x1ca   :  { %v636_v31 = vsel %vm635_vm8, %v634_v16, %v629_v26 }
 0x1cb   :  { %v1332_v60 = vpop.xlane.xlu0 %497  ;;  %v729_v20 = vsel %vm635_vm8, %v728_v22, %v724_v30  ;;  %v643_v38 = vsel %vm642_vm9, %v641_v34, %v636_v31 }
 0x1cc   :  { %v1337_v62 = vpop.xlane.xlu1 %529  ;;  %v734_v42 = vsel %vm642_vm9, %v733_v36, %v729_v20  ;;  %v655_v45 = vrot.slane %v1332_v60, %v654_v24 }
 0x1cd   :  { %v743_v47 = vrot.slane %v1337_v62, %v654_v24  ;;  %v786_v24 = vld [vmem:[#allocation3] sm:$0x3] }
 0x1cf   :  { %v496_v8 = vpop.xlane.xlu0 %495 }
 0x1d0   :  { %v528_v11 = vpop.xlane.xlu1 %527  ;;  %v648_v19 = vrot.slane %v496_v8, %v647_v18 }
 0x1d1   :  { %v738_v35 = vrot.slane %v528_v11, %v647_v18  ;;  %v769_v11 = vld [vmem:[#allocation2] sm:$0x3] }
 0x1d2   :  { %v650_v43 = vsel %vm649_vm10, %v648_v19, %v643_v38 }
 0x1d3   :  { %v502_v25 = vpop.xlane.xlu0 %501  ;;  %v739_v46 = vsel %vm649_vm10, %v738_v35, %v734_v42  ;;  %v657_v49 = vsel %vm656_vm11, %v655_v45, %v650_v43 }
 0x1d4   :  { %v534_v27 = vpop.xlane.xlu1 %533  ;;  %v744_v54 = vsel %vm656_vm11, %v743_v47, %v739_v46  ;;  %v669_v56 = vrot.slane %v502_v25, %v668_v39 }
 0x1d5   :  { %v753_v58 = vrot.slane %v534_v27, %v668_v39 }
 0x1d7   :  { %v500_v37 = vpop.xlane.xlu0 %499 }
 0x1d8   :  { %v532_v40 = vpop.xlane.xlu1 %531  ;;  %v662_v44 = vrot.slane %v500_v37, %v661_v28 }
 0x1d9   :  { %v748_v32 = vrot.slane %v532_v40, %v661_v28 }
 0x1da   :  { %v664_v55 = vsel %vm663_vm12, %v662_v44, %v657_v49 }
 0x1db   :  { %v504_v48 = vpop.xlane.xlu0 %503  ;;  %v749_v57 = vsel %vm663_vm12, %v748_v32, %v744_v54  ;;  %v671_v63 = vsel %vm670_vm13, %v669_v56, %v664_v55 }
 0x1dc   :  { %v536_v51 = vpop.xlane.xlu1 %535  ;;  %v676_v59 = vrot.slane %v504_v48, %v675_v29  ;;  %v754_v1 = vsel %vm670_vm13, %v753_v58, %v749_v57 }
 0x1dd   :  { %v758_v60 = vrot.slane %v536_v51, %v675_v29 }
 0x1de   :  { %v678_v2 = vsel %vm677_vm14, %v676_v59, %v671_v63 }
 0x1df   :  { %v506_v61 = vpop.xlane.xlu0 %505  ;;  %v759_v52 = vsel %vm677_vm14, %v758_v60, %v754_v1 }
 0x1e0   :  { %v538_v62 = vpop.xlane.xlu1 %537  ;;  %v683_v0 = vrot.slane %v506_v61, %v682_v53 }
 0x1e1   :  { %v763_v3 = vrot.slane %v538_v62, %v682_v53 }
 0x1e2   :  { %v685_v4 = vsel %vm684_vm15, %v683_v0, %v678_v2 }
 0x1e3   :  { %v764_v5 = vsel %vm684_vm15, %v763_v3, %v759_v52 }
 0x1e4   :  { %v766_v6 = vsel %vm765_vm1, %v764_v5, %v685_v4 }
 0x1e5   :  { %v768_v7 = vsel %vm544_vm2, %v766_v6, -1e+30 }
 0x1e6   :  { %v771_v8 = vsel %vm770_vm3, %v768_v7, -inf }
 0x1e7   :  { %772 = vmax.xlane.f32.xlu0 %v771_v8 }
 0x270   :  { %v773_v12 = vpop.xlane.xlu0 %772 }
 0x271   :  { %v774_v13 = vmax.f32 %v769_v11, %v773_v12 }
 0x273   :  { %v775_v14 = vsub.f32 %v769_v11, %v774_v13  ;;  %794 = vst.msk [vmem:[#allocation2] sm:$0x3] %vm61_vm0, %v774_v13  ;;  %780 = vperm.xlu1 %1013, %v774_v13  }
 0x275   :  { %v776_v22 = vmul.f32 1.442695, %v775_v14 }
 0x2ee   :  { %v781_v17 = vpop.permute.xlu1 %780 }
 0x2ef   :  { %v783_v16 = vsub.f32 %v768_v7, %v781_v17 }
 0x2f1   :  { %v784_v18 = vmul.f32 1.442695, %v783_v16 }
 0x2f3   :  { %1079 = vpow2.f32 %v784_v18 }
 0x2f4   :  { %1081 = vpow2.f32 %v776_v22 }
 0x300   :  { %v1080_v21 = vpop.eup %1079 }
 0x301   :  { %v788_v15 = vsel %vm770_vm3, %v1080_v21, 0.0  ;;  %810 = vst [vmem:[#allocation10] sm:$0x3] %v1080_v21  ;;  %v1082_v23 = vpop.eup %1081 }
 0x302   :  { %789 = vadd.xlane.f32.xlu0 %v788_v15  ;;  %v787_v25 = vmul.f32 %v1082_v23, %v786_v24 }
 0x308   :  { %v815_v31 = vld [vmem:[#allocation10] sm:$0x3] }
 0x38b   :  { %v790_v26 = vpop.xlane.xlu0 %789 }
 0x38c   :  { %v791_v50 = vadd.f32 %v790_v26, %v787_v25 }
 0x38e   :  { %793 = vst.msk [vmem:[#allocation3] sm:$0x3] %vm61_vm0, %v791_v50 }
 0x395   :  { %v814_v27 = vld [vmem:[#allocation3] sm:$0x3] }
 0x396   :  { %818 = vperm.xlu0 %1014, %v814_v27  }
 0x411   :  { %v819_v28 = vpop.permute.xlu0 %818 }
 0x412   :  { %1083 = vrcp.f32 %v819_v28 }
 0x41f   :  { %v1084_v30 = vpop.eup %1083 }
 0x420   :  { %v822_v19 = vmul.f32 %v1084_v30, %v815_v31 }
 0x422   :  { %823 = vst [vmem:[#allocation10] sm:$0x3] %v822_v19 }
 0x423   :  { %1156 = shalt.err (!%p1153_p5)
}
 0x424   :  { %833 = dma.vmem_to_hbm [thread:$0]  %s831_s5, 32, %s1384_s4, [#allocation6]  }
 0x425   :  { %1169 = dma.done.wait [#allocation6], 32  }
 0x426   :  { %1170 = vsyncadd [#allocation6], 4294967264 }
 0x427   :  { %837 = vsyncpa [#allocation5], 1 }
 0x428   :  { %838 = vsyncpa [#allocation8], 1 }
 0x429   :  { %839 = vsyncpa [#allocation6], 1 }

</bundles_post_ra>
